<compile_context>
chip_gen: v6e
topology: v6e:2x2x1
jax: 0.10.0
libtpu: 0.0.40
codegen_flags: <defaults>
</compile_context>

<pallas_src>
import jax
import jax.numpy as jnp
import numpy as np
from jax import lax
from jax.experimental import pallas as pl
from jax.experimental.pallas import tpu as pltpu


def _mlp_kernel(x_ref, w1_ref, b1_ref, w2_ref, b2_ref,
                w3_ref, b3_ref, w4_ref, b4_ref, o_ref):
    # x_ref: (TILE_B, in_size)  -- natural layout, no wrapper transpose.
    # w_k:   (fan_out, fan_in) PyTorch-native; b_k: (fan_out, 1).
    x = x_ref[...]

    # layer 1: contract fan_in of W1 (axis 1) with features of x (axis 1)
    #          -> (128, TILE_B); batch ends up on lanes for all later layers.
    h = lax.dot_general(w1_ref[...], x, (((1,), (1,)), ((), ())),
                        preferred_element_type=jnp.float32)
    h = jnp.maximum(h + b1_ref[...], 0.0)

    # layer 2: (64, 128) @ (128, TILE_B) -> (64, TILE_B)
    h = jnp.dot(w2_ref[...], h, preferred_element_type=jnp.float32)
    h = jnp.maximum(h + b2_ref[...], 0.0)

    # layer 3: (32, 64) @ (64, TILE_B) -> (32, TILE_B)
    h = jnp.dot(w3_ref[...], h, preferred_element_type=jnp.float32)
    h = jnp.maximum(h + b3_ref[...], 0.0)

    # output: (1, 32) @ (32, TILE_B) -> (1, TILE_B), lane-dense store.
    o = jnp.dot(w4_ref[...], h, preferred_element_type=jnp.float32)
    o_ref[...] = o + b4_ref[...]


def _round_up(v, m):
    return ((v + m - 1) // m) * m


def _choose_tile(batch, requested):
    """Pick a batch tile: big enough to amortize per-step overhead, clamped so
    tiny batches don't over-pad, and split when possible so v7x's 2 TCs both
    get work."""
    requested = max(256, _round_up(requested, 256))
    tile = min(requested, _round_up(batch, 256))
    b_pad = _round_up(batch, tile)
    n_tiles = b_pad // tile
    # If everything fits in one tile but the batch spans more than half of it,
    # halve the tile so two grid steps exist (feeds both v7x TensorCores;
    # harmless on v5e/v6e).
    if n_tiles == 1 and tile >= 512 and batch > tile // 2:
        tile //= 2
        b_pad = _round_up(batch, tile)
        n_tiles = b_pad // tile
    return tile, b_pad, n_tiles


def regressor_forward(x, params, *, tile_b=2048):
    """Fused 4-layer MLP forward pass.

    x: (B, input_size) float32 (natural layout, no padding required).
    params: dict with w1..w4 in PyTorch-native (fan_out, fan_in) layout and
            b1..b4 of shape (fan_out, 1).
    returns: (B, 1) float32
    """
    B, in_size = x.shape
    tile_b, b_pad, n_tiles = _choose_tile(B, tile_b)

    # Only pad the batch dim (needed so the grid tiles evenly); no feature pad,
    # no transpose -> no extra HBM pass over x.
    x_p = x if b_pad == B else jnp.pad(x, ((0, b_pad - B), (0, 0)))

    w1, w2, w3, w4 = params["w1"], params["w2"], params["w3"], params["w4"]
    b1, b2, b3, b4 = params["b1"], params["b2"], params["b3"], params["b4"]

    def const_spec(arr):
        # Full-array block, constant block index across the batch grid ->
        # DMA'd once, VMEM-resident for every grid step.
        return pl.BlockSpec(arr.shape, lambda i: (0, 0))

    out_t = pl.pallas_call(
        _mlp_kernel,
        out_shape=jax.ShapeDtypeStruct((1, b_pad), jnp.float32),
        grid=(n_tiles,),
        in_specs=[
            # x tile in natural layout: (tile_b, in_size); last dim equals the
            # full array dim, so the (8,128) constraint is satisfied.
            pl.BlockSpec((tile_b, in_size), lambda i: (i, 0)),
            const_spec(w1), const_spec(b1),
            const_spec(w2), const_spec(b2),
            const_spec(w3), const_spec(b3),
            const_spec(w4), const_spec(b4),
        ],
        # Lane-dense output tile (1, tile_b) -> unmasked vector stores.
        out_specs=pl.BlockSpec((1, tile_b), lambda i: (0, i)),
        compiler_params=pltpu.CompilerParams(
            dimension_semantics=("parallel",),
        ),
    )(x_p, w1, b1, w2, b2, w3, b3, w4, b4)

    # (1, b_pad) -> (B, 1), dropping batch padding.
    return out_t[0, :B].reshape(B, 1)


def init_params(key, input_size):
    """Deterministic init mimicking PyTorch nn.Linear defaults
    (uniform(-1/sqrt(fan_in), 1/sqrt(fan_in))), weights in (fan_out, fan_in)."""
    dims = [(input_size, 128), (128, 64), (64, 32), (32, 1)]
    params = {}
    for i, (fan_in, fan_out) in enumerate(dims, start=1):
        key, kw, kb = jax.random.split(key, 3)
        bound = 1.0 / np.sqrt(fan_in)
        params[f"w{i}"] = jax.random.uniform(
            kw, (fan_out, fan_in), jnp.float32, -bound, bound)
        params[f"b{i}"] = jax.random.uniform(
            kb, (fan_out, 1), jnp.float32, -bound, bound)
    return params


def reference_forward(x, p):
    h = jnp.maximum(x @ p["w1"].T + p["b1"].T, 0.0)
    h = jnp.maximum(h @ p["w2"].T + p["b2"].T, 0.0)
    h = jnp.maximum(h @ p["w3"].T + p["b3"].T, 0.0)
    return h @ p["w4"].T + p["b4"].T


if __name__ == "__main__":
    # California housing: 8 numeric features + 5 one-hot ocean_proximity = 13.
    INPUT_SIZE = 13
    BATCH = 8

    key = jax.random.PRNGKey(0)
    key, kx = jax.random.split(key)
    # preprocessed inputs are min-max normalized to [0, 1]
    x = jax.random.uniform(kx, (BATCH, INPUT_SIZE), jnp.float32, 0.0, 1.0)

    params = init_params(key, INPUT_SIZE)

    out = regressor_forward(x, params)
    out = jax.block_until_ready(out)

    ref = reference_forward(x, params)
    np.testing.assert_allclose(np.asarray(out), np.asarray(ref),
                               rtol=1e-5, atol=1e-5)
    assert out.shape == (BATCH, 1)
    print("KERNEL_OK")
</pallas_src>

<mosaic_0001>
module attributes {stable_mosaic.version = 11 : i64} {
  func.func @_mlp_kernel(%arg0: i32, %arg1: memref<256x13xf32, #tpu.memory_space<vmem>>, %arg2: memref<128x13xf32, #tpu.memory_space<vmem>>, %arg3: memref<128x1xf32, #tpu.memory_space<vmem>>, %arg4: memref<64x128xf32, #tpu.memory_space<vmem>>, %arg5: memref<64x1xf32, #tpu.memory_space<vmem>>, %arg6: memref<32x64xf32, #tpu.memory_space<vmem>>, %arg7: memref<32x1xf32, #tpu.memory_space<vmem>>, %arg8: memref<1x32xf32, #tpu.memory_space<vmem>>, %arg9: memref<1x1xf32, #tpu.memory_space<vmem>>, %arg10: memref<1x256xf32, #tpu.memory_space<vmem>>) attributes {dimension_semantics = [#tpu.dimension_semantics<parallel>], iteration_bounds = array<i64: 1>, scalar_prefetch = 0 : i64, scratch_operands = 0 : i64, tpu.core_type = #tpu.core_type<tc>, window_params = [{transform_indices = @transform_0, window_bounds = array<i64: 256, 13>}, {pipeline_mode = #tpu.pipeline_mode<synchronous>, transform_indices = @transform_1, window_bounds = array<i64: 128, 13>}, {pipeline_mode = #tpu.pipeline_mode<synchronous>, transform_indices = @transform_2, window_bounds = array<i64: 128, 1>}, {pipeline_mode = #tpu.pipeline_mode<synchronous>, transform_indices = @transform_3, window_bounds = array<i64: 64, 128>}, {pipeline_mode = #tpu.pipeline_mode<synchronous>, transform_indices = @transform_4, window_bounds = array<i64: 64, 1>}, {pipeline_mode = #tpu.pipeline_mode<synchronous>, transform_indices = @transform_5, window_bounds = array<i64: 32, 64>}, {pipeline_mode = #tpu.pipeline_mode<synchronous>, transform_indices = @transform_6, window_bounds = array<i64: 32, 1>}, {pipeline_mode = #tpu.pipeline_mode<synchronous>, transform_indices = @transform_7, window_bounds = array<i64: 1, 32>}, {pipeline_mode = #tpu.pipeline_mode<synchronous>, transform_indices = @transform_8, window_bounds = array<i64: 1, 1>}, {transform_indices = @transform_9, window_bounds = array<i64: 1, 256>}]} {
    %c0 = arith.constant 0 : index
    %c0_0 = arith.constant 0 : index
    %0 = vector.load %arg1[%c0, %c0_0] : memref<256x13xf32, #tpu.memory_space<vmem>>, vector<256x13xf32>
    %c0_1 = arith.constant 0 : index
    %c0_2 = arith.constant 0 : index
    %1 = vector.load %arg2[%c0_1, %c0_2] : memref<128x13xf32, #tpu.memory_space<vmem>>, vector<128x13xf32>
    %cst = arith.constant dense<0.000000e+00> : vector<128x256xf32>
    %2 = tpu.matmul %1, %0, %cst {dimension_numbers = #tpu.dot_dimension_numbers<[1], [1], [0], [0], [0, 0, 1, 0], [], []>} : vector<128x13xf32>, vector<256x13xf32>, vector<128x256xf32> -> vector<128x256xf32>
    %c0_3 = arith.constant 0 : index
    %c0_4 = arith.constant 0 : index
    %3 = vector.load %arg3[%c0_3, %c0_4] : memref<128x1xf32, #tpu.memory_space<vmem>>, vector<128x1xf32>
    %4 = vector.broadcast %3 : vector<128x1xf32> to vector<128x256xf32>
    %5 = arith.addf %2, %4 : vector<128x256xf32>
    %cst_5 = arith.constant 0.000000e+00 : f32
    %6 = vector.broadcast %cst_5 : f32 to vector<128x256xf32>
    %7 = arith.maximumf %5, %6 : vector<128x256xf32>
    %c0_6 = arith.constant 0 : index
    %c0_7 = arith.constant 0 : index
    %8 = vector.load %arg4[%c0_6, %c0_7] : memref<64x128xf32, #tpu.memory_space<vmem>>, vector<64x128xf32>
    %cst_8 = arith.constant dense<0.000000e+00> : vector<64x256xf32>
    %9 = tpu.matmul %8, %7, %cst_8 {dimension_numbers = #tpu.dot_dimension_numbers<[1], [0], [0], [1], [0, 0, 1, 1], [], []>} : vector<64x128xf32>, vector<128x256xf32>, vector<64x256xf32> -> vector<64x256xf32>
    %c0_9 = arith.constant 0 : index
    %c0_10 = arith.constant 0 : index
    %10 = vector.load %arg5[%c0_9, %c0_10] : memref<64x1xf32, #tpu.memory_space<vmem>>, vector<64x1xf32>
    %11 = vector.broadcast %10 : vector<64x1xf32> to vector<64x256xf32>
    %12 = arith.addf %9, %11 : vector<64x256xf32>
    %cst_11 = arith.constant 0.000000e+00 : f32
    %13 = vector.broadcast %cst_11 : f32 to vector<64x256xf32>
    %14 = arith.maximumf %12, %13 : vector<64x256xf32>
    %c0_12 = arith.constant 0 : index
    %c0_13 = arith.constant 0 : index
    %15 = vector.load %arg6[%c0_12, %c0_13] : memref<32x64xf32, #tpu.memory_space<vmem>>, vector<32x64xf32>
    %cst_14 = arith.constant dense<0.000000e+00> : vector<32x256xf32>
    %16 = tpu.matmul %15, %14, %cst_14 {dimension_numbers = #tpu.dot_dimension_numbers<[1], [0], [0], [1], [0, 0, 1, 1], [], []>} : vector<32x64xf32>, vector<64x256xf32>, vector<32x256xf32> -> vector<32x256xf32>
    %c0_15 = arith.constant 0 : index
    %c0_16 = arith.constant 0 : index
    %17 = vector.load %arg7[%c0_15, %c0_16] : memref<32x1xf32, #tpu.memory_space<vmem>>, vector<32x1xf32>
    %18 = vector.broadcast %17 : vector<32x1xf32> to vector<32x256xf32>
    %19 = arith.addf %16, %18 : vector<32x256xf32>
    %cst_17 = arith.constant 0.000000e+00 : f32
    %20 = vector.broadcast %cst_17 : f32 to vector<32x256xf32>
    %21 = arith.maximumf %19, %20 : vector<32x256xf32>
    %c0_18 = arith.constant 0 : index
    %c0_19 = arith.constant 0 : index
    %22 = vector.load %arg8[%c0_18, %c0_19] : memref<1x32xf32, #tpu.memory_space<vmem>>, vector<1x32xf32>
    %cst_20 = arith.constant dense<0.000000e+00> : vector<1x256xf32>
    %23 = tpu.matmul %22, %21, %cst_20 {dimension_numbers = #tpu.dot_dimension_numbers<[1], [0], [0], [1], [0, 0, 1, 1], [], []>} : vector<1x32xf32>, vector<32x256xf32>, vector<1x256xf32> -> vector<1x256xf32>
    %c0_21 = arith.constant 0 : index
    %c0_22 = arith.constant 0 : index
    %24 = vector.load %arg9[%c0_21, %c0_22] : memref<1x1xf32, #tpu.memory_space<vmem>>, vector<1x1xf32>
    %25 = vector.broadcast %24 : vector<1x1xf32> to vector<1x256xf32>
    %26 = arith.addf %23, %25 : vector<1x256xf32>
    %c0_23 = arith.constant 0 : index
    %c0_24 = arith.constant 0 : index
    %27 = vector.load %arg10[%c0_23, %c0_24] : memref<1x256xf32, #tpu.memory_space<vmem>>, vector<1x256xf32>
    tpu.vector_store %arg10[%c0_23, %c0_24], %26 {strides = array<i32>} : memref<1x256xf32, #tpu.memory_space<vmem>>, vector<1x256xf32>,
    return
  }
  func.func @transform_0(%arg0: i32) -> (i32, i32) {
    %c0_i32 = arith.constant 0 : i32
    %c0_i32_0 = arith.constant 0 : i32
    return %arg0, %c0_i32 : i32, i32
  }
  func.func @transform_1(%arg0: i32) -> (i32, i32) {
    %c0_i32 = arith.constant 0 : i32
    %c0_i32_0 = arith.constant 0 : i32
    %c0_i32_1 = arith.constant 0 : i32
    return %c0_i32, %c0_i32_0 : i32, i32
  }
  func.func @transform_2(%arg0: i32) -> (i32, i32) {
    %c0_i32 = arith.constant 0 : i32
    %c0_i32_0 = arith.constant 0 : i32
    %c0_i32_1 = arith.constant 0 : i32
    return %c0_i32, %c0_i32_0 : i32, i32
  }
  func.func @transform_3(%arg0: i32) -> (i32, i32) {
    %c0_i32 = arith.constant 0 : i32
    %c0_i32_0 = arith.constant 0 : i32
    %c0_i32_1 = arith.constant 0 : i32
    return %c0_i32, %c0_i32_0 : i32, i32
  }
  func.func @transform_4(%arg0: i32) -> (i32, i32) {
    %c0_i32 = arith.constant 0 : i32
    %c0_i32_0 = arith.constant 0 : i32
    %c0_i32_1 = arith.constant 0 : i32
    return %c0_i32, %c0_i32_0 : i32, i32
  }
  func.func @transform_5(%arg0: i32) -> (i32, i32) {
    %c0_i32 = arith.constant 0 : i32
    %c0_i32_0 = arith.constant 0 : i32
    %c0_i32_1 = arith.constant 0 : i32
    return %c0_i32, %c0_i32_0 : i32, i32
  }
  func.func @transform_6(%arg0: i32) -> (i32, i32) {
    %c0_i32 = arith.constant 0 : i32
    %c0_i32_0 = arith.constant 0 : i32
    %c0_i32_1 = arith.constant 0 : i32
    return %c0_i32, %c0_i32_0 : i32, i32
  }
  func.func @transform_7(%arg0: i32) -> (i32, i32) {
    %c0_i32 = arith.constant 0 : i32
    %c0_i32_0 = arith.constant 0 : i32
    %c0_i32_1 = arith.constant 0 : i32
    return %c0_i32, %c0_i32_0 : i32, i32
  }
  func.func @transform_8(%arg0: i32) -> (i32, i32) {
    %c0_i32 = arith.constant 0 : i32
    %c0_i32_0 = arith.constant 0 : i32
    %c0_i32_1 = arith.constant 0 : i32
    return %c0_i32, %c0_i32_0 : i32, i32
  }
  func.func @transform_9(%arg0: i32) -> (i32, i32) {
    %c0_i32 = arith.constant 0 : i32
    %c0_i32_0 = arith.constant 0 : i32
    return %c0_i32, %arg0 : i32, i32
  }
}

</mosaic_0001>

<bundles_post_ra>
// kernel: tpu_custom_call.1
= control target key start
LH: loop header
LB: loop body
LE: loop exit
PB: predicated region body
PF: predicated region fallthrough
CT: control target
= control target key end

     0   :  { %s1564_s0 = inlined_call_operand.vmem [shape: f32[256,13], index: 0, kind: input, shape index: {}]   ;;  %s1565_s1 = inlined_call_operand.vmem [shape: f32[128,13], index: 1, kind: input, shape index: {}]   ;;  %s1566_s2 = inlined_call_operand.vmem [shape: f32[128,1], index: 2, kind: input, shape index: {}]   ;;  %s1567_s3 = inlined_call_operand.vmem [shape: f32[64,128], index: 3, kind: input, shape index: {}]   ;;  %s1568_s4 = inlined_call_operand.vmem [shape: f32[64,1], index: 4, kind: input, shape index: {}]   ;;  %s1569_s5 = inlined_call_operand.vmem [shape: f32[32,64], index: 5, kind: input, shape index: {}]   ;;  %s1570_s6 = inlined_call_operand.vmem [shape: f32[32,1], index: 6, kind: input, shape index: {}]   ;;  %s1571_s7 = inlined_call_operand.vmem [shape: f32[1,32], index: 7, kind: input, shape index: {}]   ;;  %s1572_s8 = inlined_call_operand.<no memory space> [shape: f32[1,1], index: 8, kind: input, shape index: {}]   ;;  %s1573_s9 = inlined_call_operand.hbm [shape: f32[1,256], index: 9, kind: output, shape index: {}]  }
   0x1   :  { %v14_v0 = vstv %s1572_s8 }
   0x2   :  { %15 = vst [vmem:[#allocation2] sm:$0x1] %v14_v0 }
   0x3   :  { %v66_v1 = vld [vmem:[%s1564_s0 + $0xf8] sm:$0xff]  ;;  %vm179_vm0 = vcmask 105472   ;;  %v65_v3 = vld [vmem:[%s1564_s0 + $0xf0] sm:$0xff]  ;;  %v1108_v4 = vmov 0   ;;  %v64_v6 = vld [vmem:[%s1564_s0 + $0xe8] sm:$0xff] }
   0x4   :  { %v50_v2 = vld [vmem:[%s1564_s0 + $0x78] sm:$0xff]  ;;  %1016 = vmatprep.subr.msk.mxu0 %vm179_vm0, %v66_v1  ;;  %1085 = vset.pattern.permute.xlu1 %v1108_v4  ;;  %v49_v5 = vld [vmem:[%s1564_s0 + $0x70] sm:$0xff]  ;;  %v48_v7 = vld [vmem:[%s1564_s0 + $0x68] sm:$0xff] }
   0x5   :  { %1017 = vmatpush3.xpose.msk.msra.mxu0 %vm179_vm0, %v50_v2  ;;  %1084 = vset.pattern.permute.xlu0 %v1108_v4  ;;  %v63_v8 = vld [vmem:[%s1564_s0 + $0xe0] sm:$0xff]  ;;  %v62_v11 = vld [vmem:[%s1564_s0 + $0xd8] sm:$0xff]  ;;  %v96_v12 = vld [vmem:[%s1566_s2 + $0x68] sm:$0xff] }
   0x6   :  { %1018 = vmatprep.subr.msk.mxu0 %vm179_vm0, %v65_v3  ;;  %v1195_v9 = vld [vmem:[%s1565_s1] sm:$0xff]  ;;  %v46_v13 = vld [vmem:[%s1564_s0 + $0x58] sm:$0xff]  ;;  %166 = vperm.xlu1 %1085, %v96_v12   ;;  %v61_v15 = vld [vmem:[%s1564_s0 + $0xd0] sm:$0xff] }
   0x7   :  { %v47_v10 = vld [vmem:[%s1564_s0 + $0x60] sm:$0xff]  ;;  %1048 = vmatprep.mubr.msk.f32.mxu0 %vm179_vm0, %v1195_v9  ;;  %v98_v14 = vld [vmem:[%s1566_s2 + $0x78] sm:$0xff]  ;;  %v97_v17 = vld [vmem:[%s1566_s2 + $0x70] sm:$0xff] }
   0x8   :  { %176 = vperm.xlu0 %1084, %v98_v14   ;;  %v95_v16 = vld [vmem:[%s1566_s2 + $0x60] sm:$0xff]  ;;  %v45_v18 = vld [vmem:[%s1564_s0 + $0x50] sm:$0xff]  ;;  %v60_v19 = vld [vmem:[%s1564_s0 + $0xc8] sm:$0xff] }
   0x9   :  { %1019 = vmatpush3.xpose.msk.msra.mxu0 %vm179_vm0, %v49_v5  ;;  %v93_v20 = vld [vmem:[%s1566_s2 + $0x50] sm:$0xff]  ;;  %v94_v21 = vld [vmem:[%s1566_s2 + $0x58] sm:$0xff]  ;;  %v44_v22 = vld [vmem:[%s1564_s0 + $0x48] sm:$0xff] }
   0xa   :  { %1020 = vmatprep.subr.msk.mxu0 %vm179_vm0, %v64_v6  ;;  %161 = vperm.xlu1 %1085, %v95_v16   ;;  %v59_v23 = vld [vmem:[%s1564_s0 + $0xc0] sm:$0xff]  ;;  %v92_v25 = vld [vmem:[%s1566_s2 + $0x48] sm:$0xff] }
   0xb   :  { %v91_v24 = vld [vmem:[%s1566_s2 + $0x40] sm:$0xff] }
   0xc   :  { %171 = vperm.xlu0 %1084, %v97_v17  }
   0xd   :  { %1021 = vmatpush3.xpose.msk.msra.mxu0 %vm179_vm0, %v48_v7 }
   0xe   :  { %1022 = vmatprep.subr.msk.mxu0 %vm179_vm0, %v63_v8  ;;  %151 = vperm.xlu1 %1085, %v93_v20  }
  0x10   :  { %156 = vperm.xlu0 %1084, %v94_v21  }
  0x11   :  { %1023 = vmatpush3.xpose.msk.msra.mxu0 %vm179_vm0, %v47_v10 }
  0x12   :  { %1024 = vmatprep.subr.msk.mxu0 %vm179_vm0, %v62_v11 }
  0x15   :  { %1025 = vmatpush3.xpose.msk.msra.mxu0 %vm179_vm0, %v46_v13 }
  0x16   :  { %1026 = vmatprep.subr.msk.mxu0 %vm179_vm0, %v61_v15 }
  0x19   :  { %1027 = vmatpush3.xpose.msk.msra.mxu0 %vm179_vm0, %v45_v18 }
  0x1a   :  { %1028 = vmatprep.subr.msk.mxu0 %vm179_vm0, %v60_v19 }
  0x1b   :  { %16 = vsyncpa [#allocation4], 0  ;;  %v43_v26 = vld [vmem:[%s1564_s0 + $0x40] sm:$0xff]  ;;  %141 = vperm.xlu1 %1085, %v91_v24   ;;  %v58_v27 = vld [vmem:[%s1564_s0 + $0xb8] sm:$0xff]  ;;  %146 = vperm.xlu0 %1084, %v92_v25   ;;  %v1109_v15 = vmov 0.0   ;;  %vm730_vm1 = vcmask 523264  }
  0x1c   :  { %v89_v28 = vld [vmem:[%s1566_s2 + $0x30] sm:$0xff]  ;;  %v90_v29 = vld [vmem:[%s1566_s2 + $0x38] sm:$0xff]  ;;  %v87_v32 = vld [vmem:[%s1566_s2 + $0x20] sm:$0xff]  ;;  %637 = vmatprep.mubr.f32.mxu1 %v1109_v15  ;;  %vm851_vm2 = vcmask 261120   ;;  %s1111_s19 = smov [#allocation3]  }
  0x1d   :  { %1029 = vmatpush3.xpose.msk.msra.mxu0 %vm179_vm0, %v44_v22  ;;  %v42_v30 = vld [vmem:[%s1564_s0 + $0x38] sm:$0xff]  ;;  %v57_v31 = vld [vmem:[%s1564_s0 + $0xb0] sm:$0xff]  ;;  %v88_v33 = vld [vmem:[%s1566_s2 + $0x28] sm:$0xff] }
  0x1e   :  { %1030 = vmatprep.subr.msk.mxu0 %vm179_vm0, %v59_v23  ;;  %v41_v34 = vld [vmem:[%s1564_s0 + $0x30] sm:$0xff]  ;;  %v56_v35 = vld [vmem:[%s1564_s0 + $0xa8] sm:$0xff]  ;;  %v86_v37 = vld [vmem:[%s1566_s2 + $0x18] sm:$0xff] }
  0x1f   :  { %131 = vperm.xlu1 %1085, %v89_v28   ;;  %136 = vperm.xlu0 %1084, %v90_v29   ;;  %v85_v36 = vld [vmem:[%s1566_s2 + $0x10] sm:$0xff]  ;;  %v40_v38 = vld [vmem:[%s1564_s0 + $0x28] sm:$0xff]  ;;  %v55_v39 = vld [vmem:[%s1564_s0 + $0xa0] sm:$0xff] }
  0x20   :  { %v83_v40 = vld [vmem:[%s1566_s2] sm:$0xff]  ;;  %v84_v41 = vld [vmem:[%s1566_s2 + $0x8] sm:$0xff]  ;;  %v54_v43 = vld [vmem:[%s1564_s0 + $0x98] sm:$0xff] }
  0x21   :  { %1031 = vmatpush3.xpose.msk.msra.mxu0 %vm179_vm0, %v43_v26  ;;  %v39_v42 = vld [vmem:[%s1564_s0 + $0x20] sm:$0xff]  ;;  %v531_v44 = vld [vmem:[%s1568_s4 + $0x30] sm:$0xff]  ;;  %v532_v45 = vld [vmem:[%s1568_s4 + $0x38] sm:$0xff] }
  0x22   :  { %1032 = vmatprep.subr.msk.mxu0 %vm179_vm0, %v58_v27  ;;  %v38_v46 = vld [vmem:[%s1564_s0 + $0x18] sm:$0xff]  ;;  %v53_v47 = vld [vmem:[%s1564_s0 + $0x90] sm:$0xff]  ;;  %v529_v48 = vld [vmem:[%s1568_s4 + $0x20] sm:$0xff] }
  0x23   :  { %121 = vperm.xlu1 %1085, %v87_v32   ;;  %126 = vperm.xlu0 %1084, %v88_v33   ;;  %v530_v49 = vld [vmem:[%s1568_s4 + $0x28] sm:$0xff]  ;;  %v37_v50 = vld [vmem:[%s1564_s0 + $0x10] sm:$0xff]  ;;  %v528_v53 = vld [vmem:[%s1568_s4 + $0x18] sm:$0xff] }
  0x24   :  { %v52_v51 = vld [vmem:[%s1564_s0 + $0x88] sm:$0xff]  ;;  %v527_v52 = vld [vmem:[%s1568_s4 + $0x10] sm:$0xff]  ;;  %v51_v55 = vld [vmem:[%s1564_s0 + $0x80] sm:$0xff] }
  0x25   :  { %1033 = vmatpush3.xpose.msk.msra.mxu0 %vm179_vm0, %v42_v30  ;;  %v36_v54 = vld [vmem:[%s1564_s0 + $0x8] sm:$0xff]  ;;  %v525_v56 = vld [vmem:[%s1568_s4] sm:$0xff]  ;;  %v708_v59 = vld [vmem:[%s1570_s6 + $0x10] sm:$0xff] }
  0x26   :  { %1034 = vmatprep.subr.msk.mxu0 %vm179_vm0, %v57_v31  ;;  %v526_v57 = vld [vmem:[%s1568_s4 + $0x8] sm:$0xff]  ;;  %v35_v58 = vld [vmem:[%s1564_s0] sm:$0xff]  ;;  %v709_v60 = vld [vmem:[%s1570_s6 + $0x18] sm:$0xff] }
  0x27   :  { %111 = vperm.xlu1 %1085, %v85_v36   ;;  %116 = vperm.xlu0 %1084, %v86_v37   ;;  %v68_v61 = vld [vmem:[%s1565_s1 + $0x8] sm:$0xff]  ;;  %v706_v62 = vld [vmem:[%s1570_s6] sm:$0xff]  ;;  %v69_v0 = vld [vmem:[%s1565_s1 + $0x10] sm:$0xff] }
  0x28   :  { %v707_v63 = vld [vmem:[%s1570_s6 + $0x8] sm:$0xff]  ;;  %v841_v1 = vld [vmem:[#allocation2] sm:$0x1]  ;;  %v70_v2 = vld [vmem:[%s1565_s1 + $0x18] sm:$0xff] }
  0x29   :  { %1035 = vmatpush3.xpose.msk.msra.mxu0 %vm179_vm0, %v41_v34  ;;  %v71_v3 = vld [vmem:[%s1565_s1 + $0x20] sm:$0xff]  ;;  %v72_v4 = vld [vmem:[%s1565_s1 + $0x28] sm:$0xff]  ;;  %v73_v5 = vld [vmem:[%s1565_s1 + $0x30] sm:$0xff] }
  0x2a   :  { %1036 = vmatprep.subr.msk.mxu0 %vm179_vm0, %v56_v35  ;;  %v74_v6 = vld [vmem:[%s1565_s1 + $0x38] sm:$0xff]  ;;  %v75_v7 = vld [vmem:[%s1565_s1 + $0x40] sm:$0xff]  ;;  %v76_v8 = vld [vmem:[%s1565_s1 + $0x48] sm:$0xff] }
  0x2b   :  { %101 = vperm.xlu1 %1085, %v83_v40   ;;  %106 = vperm.xlu0 %1084, %v84_v41   ;;  %v78_v10 = vld [vmem:[%s1565_s1 + $0x58] sm:$0xff]  ;;  %v79_v11 = vld [vmem:[%s1565_s1 + $0x60] sm:$0xff]  ;;  %v80_v12 = vld [vmem:[%s1565_s1 + $0x68] sm:$0xff] }
  0x2c   :  { %v81_v13 = vld [vmem:[%s1565_s1 + $0x70] sm:$0xff]  ;;  %v82_v14 = vld [vmem:[%s1565_s1 + $0x78] sm:$0xff] }
  0x2d   :  { %1037 = vmatpush3.xpose.msk.msra.mxu0 %vm179_vm0, %v40_v38 }
  0x2e   :  { %1038 = vmatprep.subr.msk.mxu0 %vm179_vm0, %v55_v39 }
  0x2f   :  { %565 = vperm.xlu1 %1085, %v531_v44   ;;  %570 = vperm.xlu0 %1084, %v532_v45  }
  0x31   :  { %1039 = vmatpush3.xpose.msk.msra.mxu0 %vm179_vm0, %v39_v42 }
  0x32   :  { %1040 = vmatprep.subr.msk.mxu0 %vm179_vm0, %v54_v43 }
  0x33   :  { %555 = vperm.xlu1 %1085, %v529_v48   ;;  %560 = vperm.xlu0 %1084, %v530_v49  }
  0x35   :  { %1041 = vmatpush3.xpose.msk.msra.mxu0 %vm179_vm0, %v38_v46 }
  0x36   :  { %1042 = vmatprep.subr.msk.mxu0 %vm179_vm0, %v53_v47 }
  0x37   :  { %545 = vperm.xlu1 %1085, %v527_v52   ;;  %550 = vperm.xlu0 %1084, %v528_v53  }
  0x39   :  { %1043 = vmatpush3.xpose.msk.msra.mxu0 %vm179_vm0, %v37_v50 }
  0x3a   :  { %1044 = vmatprep.subr.msk.mxu0 %vm179_vm0, %v52_v51 }
  0x3b   :  { %535 = vperm.xlu1 %1085, %v525_v56   ;;  %540 = vperm.xlu0 %1084, %v526_v57  }
  0x3d   :  { %1045 = vmatpush3.xpose.msk.msra.mxu0 %vm179_vm0, %v36_v54 }
  0x3e   :  { %1046 = vmatprep.subr.msk.mxu0 %vm179_vm0, %v51_v55 }
  0x3f   :  { %722 = vperm.xlu1 %1085, %v708_v59   ;;  %727 = vperm.xlu0 %1084, %v709_v60  }
  0x41   :  { %1047 = vmatpush3.xpose.msk.msra.mxu0 %vm179_vm0, %v35_v58 }
  0x43   :  { %712 = vperm.xlu1 %1085, %v706_v62   ;;  %717 = vperm.xlu0 %1084, %v707_v63  }
  0x44   :  { %1049 = vmatmul.mubr.msk.f32.vlgmr.msra.gmra.mxu0 %vm179_vm0, %v1195_v9  ;;  %v77_v9 = vld [vmem:[%s1565_s1 + $0x50] sm:$0xff] }
  0x45   :  { %1050 = vmatprep.mubr.msk.f32.mxu0 %vm179_vm0, %v68_v61 }
  0x47   :  { %844 = vperm.xlu0 %1084, %v841_v1  }
  0x48   :  { %1051 = vmatmul.mubr.msk.f32.gmra.mxu0 %vm179_vm0, %v68_v61 }
  0x49   :  { %1052 = vmatprep.mubr.msk.f32.mxu0 %vm179_vm0, %v69_v0 }
  0x4c   :  { %1053 = vmatmul.mubr.msk.f32.gmra.mxu0 %vm179_vm0, %v69_v0 }
  0x4d   :  { %1054 = vmatprep.mubr.msk.f32.mxu0 %vm179_vm0, %v70_v2 }
  0x50   :  { %1055 = vmatmul.mubr.msk.f32.gmra.mxu0 %vm179_vm0, %v70_v2 }
  0x51   :  { %1056 = vmatprep.mubr.msk.f32.mxu0 %vm179_vm0, %v71_v3 }
  0x54   :  { %1057 = vmatmul.mubr.msk.f32.gmra.mxu0 %vm179_vm0, %v71_v3 }
  0x55   :  { %1058 = vmatprep.mubr.msk.f32.mxu0 %vm179_vm0, %v72_v4 }
  0x58   :  { %1059 = vmatmul.mubr.msk.f32.gmra.mxu0 %vm179_vm0, %v72_v4 }
  0x59   :  { %1060 = vmatprep.mubr.msk.f32.mxu0 %vm179_vm0, %v73_v5 }
  0x5c   :  { %1061 = vmatmul.mubr.msk.f32.gmra.mxu0 %vm179_vm0, %v73_v5 }
  0x5d   :  { %1062 = vmatprep.mubr.msk.f32.mxu0 %vm179_vm0, %v74_v6 }
  0x60   :  { %1063 = vmatmul.mubr.msk.f32.gmra.mxu0 %vm179_vm0, %v74_v6 }
  0x61   :  { %1064 = vmatprep.mubr.msk.f32.mxu0 %vm179_vm0, %v75_v7 }
  0x64   :  { %1065 = vmatmul.mubr.msk.f32.gmra.mxu0 %vm179_vm0, %v75_v7 }
  0x65   :  { %1066 = vmatprep.mubr.msk.f32.mxu0 %vm179_vm0, %v76_v8 }
  0x68   :  { %1067 = vmatmul.mubr.msk.f32.gmra.mxu0 %vm179_vm0, %v76_v8 }
  0x69   :  { %1068 = vmatprep.mubr.msk.f32.mxu0 %vm179_vm0, %v77_v9 }
  0x6c   :  { %1069 = vmatmul.mubr.msk.f32.gmra.mxu0 %vm179_vm0, %v77_v9 }
  0x6d   :  { %1070 = vmatprep.mubr.msk.f32.mxu0 %vm179_vm0, %v78_v10 }
  0x70   :  { %1071 = vmatmul.mubr.msk.f32.gmra.mxu0 %vm179_vm0, %v78_v10 }
  0x71   :  { %1072 = vmatprep.mubr.msk.f32.mxu0 %vm179_vm0, %v79_v11 }
  0x74   :  { %1073 = vmatmul.mubr.msk.f32.gmra.mxu0 %vm179_vm0, %v79_v11 }
  0x75   :  { %1074 = vmatprep.mubr.msk.f32.mxu0 %vm179_vm0, %v80_v12 }
  0x78   :  { %1075 = vmatmul.mubr.msk.f32.gmra.mxu0 %vm179_vm0, %v80_v12 }
  0x79   :  { %1076 = vmatprep.mubr.msk.f32.mxu0 %vm179_vm0, %v81_v13 }
  0x7c   :  { %1077 = vmatmul.mubr.msk.f32.gmra.mxu0 %vm179_vm0, %v81_v13 }
  0x7d   :  { %1078 = vmatprep.mubr.msk.f32.mxu0 %vm179_vm0, %v82_v14 }
  0x80   :  { %1079 = vmatmul.mubr.msk.f32.gmra.mxu0 %vm179_vm0, %v82_v14 }
  0x81   :  { %v167_v41 = vpop.permute.xlu1 %166 }
  0x83   :  { %v177_v39 = vpop.permute.xlu0 %176 }
  0x85   :  { %v162_v46 = vpop.permute.xlu1 %161 }
  0x87   :  { %v172_v44 = vpop.permute.xlu0 %171 }
  0x89   :  { %v152_v51 = vpop.permute.xlu1 %151 }
  0x8b   :  { %v157_v49 = vpop.permute.xlu0 %156 }
  0x96   :  { %v147_v55 = vpop.permute.xlu0 %146  ;;  %v142_v59 = vpop.permute.xlu1 %141 }
  0x9a   :  { %v137_v4 = vpop.permute.xlu0 %136  ;;  %v132_v9 = vpop.permute.xlu1 %131 }
 0x104   :  { %v1462_v16 = vpop.f32.mrf.mxu0 }
 0x106   :  { %v1464_v17 = vpop.f32.mrf.mxu0 }
 0x108   :  { %v1466_v18 = vpop.f32.mrf.mxu0 }
 0x10a   :  { %v1468_v19 = vpop.f32.mrf.mxu0 }
 0x10c   :  { %v1470_v20 = vpop.f32.mrf.mxu0 }
 0x10e   :  { %v1472_v21 = vpop.f32.mrf.mxu0 }
 0x110   :  { %v1474_v22 = vpop.f32.mrf.mxu0 }
 0x112   :  { %v1476_v23 = vpop.f32.mrf.mxu0 }
 0x114   :  { %v1478_v24 = vpop.f32.mrf.mxu0 }
 0x116   :  { %v1480_v25 = vpop.f32.mrf.mxu0 }
 0x118   :  { %v1482_v26 = vpop.f32.mrf.mxu0 }
 0x11a   :  { %v1484_v27 = vpop.f32.mrf.mxu0 }
 0x11c   :  { %v1486_v28 = vpop.f32.mrf.mxu0 }
 0x11e   :  { %v1488_v29 = vpop.f32.mrf.mxu0 }
 0x120   :  { %v1490_v30 = vpop.f32.mrf.mxu0 }
 0x122   :  { %v1492_v31 = vpop.f32.mrf.mxu0 }
 0x124   :  { %v438_v32 = vpop.f32.mrf.mxu0 }
 0x126   :  { %v440_v33 = vpop.f32.mrf.mxu0 }
 0x128   :  { %v444_v34 = vpop.f32.mrf.mxu0 }
 0x12a   :  { %v446_v35 = vpop.f32.mrf.mxu0 }
 0x12b   :  { %v447_v14 = vadd.f32 %v446_v35, %v147_v55 }
 0x12c   :  { %v450_v36 = vpop.f32.mrf.mxu0 }
 0x12d   :  { %v451_v12 = vadd.f32 %v450_v36, %v152_v51  ;;  %v433_v36 = vadd.f32 %v1490_v30, %v137_v4 }
 0x12e   :  { %v452_v37 = vpop.f32.mrf.mxu0 }
 0x12f   :  { %v453_v10 = vadd.f32 %v452_v37, %v152_v51  ;;  %v435_v37 = vadd.f32 %v1492_v31, %v137_v4  ;;  %v520_v4 = vld [vmem:[%s1567_s3 + $0x18] sm:$0xff] }
 0x130   :  { %v456_v38 = vpop.f32.mrf.mxu0 }
 0x131   :  { %v457_v7 = vadd.f32 %v456_v38, %v157_v49  ;;  %v439_v38 = vadd.f32 %v438_v32, %v142_v59  ;;  %v500_v51 = vmax.f32 %v435_v37, 0.0 }
 0x132   :  { %v458_v40 = vpop.f32.mrf.mxu0 }
 0x133   :  { %v459_v5 = vadd.f32 %v458_v40, %v157_v49  ;;  %v441_v40 = vadd.f32 %v440_v33, %v142_v59  ;;  %v427_v33 = vadd.f32 %v1486_v28, %v132_v9  ;;  %v501_v49 = vmax.f32 %v439_v38, 0.0 }
 0x134   :  { %v462_v42 = vpop.f32.mrf.mxu0 }
 0x135   :  { %v463_v2 = vadd.f32 %v462_v42, %v162_v46  ;;  %v507_v42 = vmax.f32 %v457_v7, 0.0  ;;  %v523_v7 = vld [vmem:[%s1567_s3 + $0x30] sm:$0xff] }
 0x136   :  { %v464_v43 = vpop.f32.mrf.mxu0 }
 0x137   :  { %v465_v0 = vadd.f32 %v464_v43, %v162_v46  ;;  %v509_v13 = vmax.f32 %v463_v2, 0.0  ;;  %v127_v43 = vpop.permute.xlu0 %126  ;;  %v122_v46 = vpop.permute.xlu1 %121 }
 0x138   :  { %v468_v45 = vpop.f32.mrf.mxu0  ;;  %v421_v31 = vadd.f32 %v1482_v26, %v127_v43 }
 0x139   :  { %v469_v62 = vadd.f32 %v468_v45, %v167_v41  ;;  %v510_v11 = vmax.f32 %v465_v0, 0.0  ;;  %v505_v45 = vmax.f32 %v451_v12, 0.0 }
 0x13a   :  { %v470_v47 = vpop.f32.mrf.mxu0 }
 0x13b   :  { %v471_v60 = vadd.f32 %v470_v47, %v167_v41  ;;  %v511_v8 = vmax.f32 %v469_v62, 0.0  ;;  %v445_v41 = vadd.f32 %v444_v34, %v147_v55  ;;  %v504_v47 = vmax.f32 %v447_v14, 0.0  ;;  %v117_v32 = vpop.permute.xlu0 %116  ;;  %v112_v30 = vpop.permute.xlu1 %111 }
 0x13c   :  { %v474_v48 = vpop.f32.mrf.mxu0  ;;  %v429_v34 = vadd.f32 %v1488_v29, %v132_v9  ;;  %v415_v29 = vadd.f32 %v1478_v24, %v122_v46  ;;  %v497_v55 = vmax.f32 %v427_v33, 0.0  ;;  %v411_v28 = vadd.f32 %v1476_v23, %v117_v32 }
 0x13d   :  { %v475_v58 = vadd.f32 %v474_v48, %v172_v44  ;;  %v512_v6 = vmax.f32 %v471_v60, 0.0  ;;  %v503_v35 = vmax.f32 %v445_v41, 0.0  ;;  %v502_v48 = vmax.f32 %v441_v40, 0.0 }
 0x13e   :  { %v476_v50 = vpop.f32.mrf.mxu0  ;;  %v493_v60 = vmax.f32 %v415_v29, 0.0  ;;  %v492_v62 = vmax.f32 %v411_v28, 0.0 }
 0x13f   :  { %v477_v56 = vadd.f32 %v476_v50, %v172_v44  ;;  %v513_v3 = vmax.f32 %v475_v58, 0.0  ;;  %v506_v44 = vmax.f32 %v453_v10, 0.0  ;;  %v423_v50 = vadd.f32 %v1484_v27, %v127_v43  ;;  %v107_v26 = vpop.permute.xlu0 %106  ;;  %v102_v24 = vpop.permute.xlu1 %101 }
 0x140   :  { %v480_v52 = vpop.f32.mrf.mxu0  ;;  %v409_v27 = vadd.f32 %v1474_v22, %v117_v32  ;;  %v405_v58 = vadd.f32 %v1472_v21, %v112_v30  ;;  %v397_v23 = vadd.f32 %v1466_v18, %v107_v26  ;;  %v393_v22 = vadd.f32 %v1464_v17, %v102_v24  ;;  %v517_v18 = vld [vmem:[%s1567_s3] sm:$0xff]  ;;  %v519_v17 = vld [vmem:[%s1567_s3 + $0x10] sm:$0xff] }
 0x141   :  { %v481_v53 = vadd.f32 %v480_v52, %v177_v39  ;;  %v514_v1 = vmax.f32 %v477_v56, 0.0  ;;  %v499_v52 = vmax.f32 %v433_v36, 0.0  ;;  %v496_v56 = vmax.f32 %v423_v50, 0.0 }
 0x142   :  { %v482_v54 = vpop.f32.mrf.mxu0  ;;  %v490_v0 = vmax.f32 %v405_v58, 0.0  ;;  %v391_v21 = vadd.f32 %v1462_v16, %v102_v24  ;;  %v487_v2 = vmax.f32 %v397_v23, 0.0  ;;  %v518_v16 = vld [vmem:[%s1567_s3 + $0x8] sm:$0xff] }
 0x143   :  { %v483_v57 = vadd.f32 %v482_v54, %v177_v39  ;;  %v515_v63 = vmax.f32 %v481_v53, 0.0  ;;  %v508_v39 = vmax.f32 %v459_v5, 0.0  ;;  %v417_v53 = vadd.f32 %v1480_v25, %v122_v46  ;;  %v521_v5 = vld [vmem:[%s1567_s3 + $0x20] sm:$0xff] }
 0x144   :  { %v498_v54 = vmax.f32 %v429_v34, 0.0  ;;  %v403_v25 = vadd.f32 %v1470_v20, %v112_v30 }
 0x145   :  { %v516_v61 = vmax.f32 %v483_v57, 0.0  ;;  %v495_v57 = vmax.f32 %v421_v31, 0.0  ;;  %v494_v59 = vmax.f32 %v417_v53, 0.0 }
 0x147   :  { %573 = vmatprep.subr.mxu1 %v516_v61  ;;  %v399_v61 = vadd.f32 %v1468_v19, %v107_v26  ;;  %v485_v19 = vmax.f32 %v391_v21, 0.0 }
 0x148   :  { %574 = vmatpush1.msra.mxu1 %v515_v63  ;;  %v491_v63 = vmax.f32 %v409_v27, 0.0 }
 0x149   :  { %575 = vmatprep.subr.mxu1 %v514_v1  ;;  %v489_v1 = vmax.f32 %v403_v25, 0.0  ;;  %v488_v20 = vmax.f32 %v399_v61, 0.0 }
 0x14a   :  { %576 = vmatpush1.msra.mxu1 %v513_v3  ;;  %v486_v3 = vmax.f32 %v393_v22, 0.0 }
 0x14b   :  { %577 = vmatprep.subr.mxu1 %v512_v6  ;;  %v522_v6 = vld [vmem:[%s1567_s3 + $0x28] sm:$0xff] }
 0x14c   :  { %578 = vmatpush1.msra.mxu1 %v511_v8  ;;  %v524_v8 = vld [vmem:[%s1567_s3 + $0x38] sm:$0xff] }
 0x14d   :  { %579 = vmatprep.subr.mxu1 %v510_v11 }
 0x14e   :  { %580 = vmatpush1.msra.mxu1 %v509_v13 }
 0x14f   :  { %581 = vmatprep.subr.mxu1 %v508_v39 }
 0x150   :  { %582 = vmatpush1.msra.mxu1 %v507_v42 }
 0x151   :  { %583 = vmatprep.subr.mxu1 %v506_v44  ;;  %v571_v44 = vpop.permute.xlu0 %570 }
 0x152   :  { %584 = vmatpush1.msra.mxu1 %v505_v45  ;;  %v566_v45 = vpop.permute.xlu1 %565 }
 0x153   :  { %585 = vmatprep.subr.mxu1 %v504_v47 }
 0x154   :  { %586 = vmatpush1.msra.mxu1 %v503_v35 }
 0x155   :  { %587 = vmatprep.subr.mxu1 %v502_v48  ;;  %v561_v47 = vpop.permute.xlu0 %560 }
 0x156   :  { %588 = vmatpush1.msra.mxu1 %v501_v49  ;;  %v556_v35 = vpop.permute.xlu1 %555 }
 0x157   :  { %589 = vmatprep.subr.mxu1 %v500_v51 }
 0x158   :  { %590 = vmatpush1.msra.mxu1 %v499_v52 }
 0x159   :  { %591 = vmatprep.subr.mxu1 %v498_v54  ;;  %v551_v31 = vpop.permute.xlu0 %550 }
 0x15a   :  { %592 = vmatpush1.msra.mxu1 %v497_v55  ;;  %v546_v29 = vpop.permute.xlu1 %545 }
 0x15b   :  { %593 = vmatprep.subr.mxu1 %v496_v56 }
 0x15c   :  { %594 = vmatpush1.msra.mxu1 %v495_v57 }
 0x15d   :  { %595 = vmatprep.subr.mxu1 %v494_v59  ;;  %v541_v25 = vpop.permute.xlu0 %540 }
 0x15e   :  { %596 = vmatpush1.msra.mxu1 %v493_v60  ;;  %v536_v23 = vpop.permute.xlu1 %535 }
 0x15f   :  { %597 = vmatprep.subr.mxu1 %v492_v62 }
 0x160   :  { %598 = vmatpush1.msra.mxu1 %v491_v63 }
 0x161   :  { %599 = vmatprep.subr.mxu1 %v490_v0 }
 0x162   :  { %600 = vmatpush1.msra.mxu1 %v489_v1 }
 0x163   :  { %601 = vmatprep.subr.mxu1 %v488_v20 }
 0x164   :  { %602 = vmatpush1.msra.mxu1 %v487_v2 }
 0x165   :  { %603 = vmatprep.subr.mxu1 %v486_v3 }
 0x166   :  { %604 = vmatpush1.msra.mxu1 %v485_v19 }
 0x167   :  { %638 = vmatmul.mubr.f32.vlgmr.msra.gmra.mxu1 %v517_v18 }
 0x168   :  { %643 = vmatprep.mubr.f32.mxu1 %v1109_v15 }
 0x16b   :  { %644 = vmatmul.mubr.f32.gmra.mxu1 %v518_v16  ;;  %v702_v16 = vld [vmem:[%s1569_s5] sm:$0xff] }
 0x16c   :  { %649 = vmatprep.mubr.f32.mxu1 %v1109_v15 }
 0x16f   :  { %650 = vmatmul.mubr.f32.gmra.mxu1 %v519_v17  ;;  %v703_v17 = vld [vmem:[%s1569_s5 + $0x8] sm:$0xff] }
 0x170   :  { %655 = vmatprep.mubr.f32.mxu1 %v1109_v15 }
 0x173   :  { %656 = vmatmul.mubr.f32.gmra.mxu1 %v520_v4  ;;  %v704_v4 = vld [vmem:[%s1569_s5 + $0x10] sm:$0xff] }
 0x174   :  { %661 = vmatprep.mubr.f32.mxu1 %v1109_v15 }
 0x177   :  { %662 = vmatmul.mubr.f32.gmra.mxu1 %v521_v5  ;;  %v705_v5 = vld [vmem:[%s1569_s5 + $0x18] sm:$0xff] }
 0x178   :  { %667 = vmatprep.mubr.f32.mxu1 %v1109_v15 }
 0x17b   :  { %668 = vmatmul.mubr.f32.gmra.mxu1 %v522_v6 }
 0x17c   :  { %673 = vmatprep.mubr.f32.mxu1 %v1109_v15 }
 0x17f   :  { %674 = vmatmul.mubr.f32.gmra.mxu1 %v523_v7 }
 0x180   :  { %679 = vmatprep.mubr.f32.mxu1 %v1109_v15 }
 0x183   :  { %680 = vmatmul.mubr.f32.gmra.mxu1 %v524_v8 }
 0x184   :  { %807 = vmatprep.mubr.f32.mxu1 %v1109_v15 }
 0x227   :  { %v639_v9 = vpop.f32.mrf.mxu1 }
 0x228   :  { %v640_v1 = vadd.f32 %v639_v9, %v536_v23 }
 0x229   :  { %v641_v10 = vpop.f32.mrf.mxu1 }
 0x22a   :  { %v642_v0 = vadd.f32 %v641_v10, %v536_v23  ;;  %v686_v18 = vmax.f32 %v640_v1, 0.0 }
 0x22b   :  { %v645_v11 = vpop.f32.mrf.mxu1 }
 0x22c   :  { %v646_v63 = vadd.f32 %v645_v11, %v541_v25  ;;  %v687_v19 = vmax.f32 %v642_v0, 0.0  ;;  %v728_v11 = vpop.permute.xlu0 %727 }
 0x22d   :  { %v647_v12 = vpop.f32.mrf.mxu1 }
 0x22e   :  { %v648_v61 = vadd.f32 %v647_v12, %v541_v25  ;;  %v688_v3 = vmax.f32 %v646_v63, 0.0 }
 0x22f   :  { %v651_v13 = vpop.f32.mrf.mxu1 }
 0x230   :  { %v652_v60 = vadd.f32 %v651_v13, %v546_v29  ;;  %v689_v2 = vmax.f32 %v648_v61, 0.0  ;;  %v723_v13 = vpop.permute.xlu1 %722 }
 0x231   :  { %v653_v14 = vpop.f32.mrf.mxu1 }
 0x232   :  { %v654_v58 = vadd.f32 %v653_v14, %v546_v29  ;;  %v690_v20 = vmax.f32 %v652_v60, 0.0 }
 0x233   :  { %v657_v39 = vpop.f32.mrf.mxu1 }
 0x234   :  { %v658_v57 = vadd.f32 %v657_v39, %v551_v31  ;;  %v691_v21 = vmax.f32 %v654_v58, 0.0 }
 0x235   :  { %v659_v41 = vpop.f32.mrf.mxu1 }
 0x236   :  { %v660_v56 = vadd.f32 %v659_v41, %v551_v31  ;;  %v692_v22 = vmax.f32 %v658_v57, 0.0 }
 0x237   :  { %v663_v42 = vpop.f32.mrf.mxu1 }
 0x238   :  { %v664_v55 = vadd.f32 %v663_v42, %v556_v35  ;;  %v693_v62 = vmax.f32 %v660_v56, 0.0 }
 0x239   :  { %v665_v43 = vpop.f32.mrf.mxu1 }
 0x23a   :  { %v666_v53 = vadd.f32 %v665_v43, %v556_v35  ;;  %v694_v24 = vmax.f32 %v664_v55, 0.0 }
 0x23b   :  { %v669_v40 = vpop.f32.mrf.mxu1 }
 0x23c   :  { %v670_v52 = vadd.f32 %v669_v40, %v561_v47  ;;  %v695_v59 = vmax.f32 %v666_v53, 0.0  ;;  %v718_v40 = vpop.permute.xlu0 %717 }
 0x23d   :  { %v671_v38 = vpop.f32.mrf.mxu1 }
 0x23e   :  { %v672_v50 = vadd.f32 %v671_v38, %v561_v47  ;;  %v696_v26 = vmax.f32 %v670_v52, 0.0  ;;  %v1110_v52 = vmov 1966171168  }
 0x23f   :  { %v675_v46 = vpop.f32.mrf.mxu1 }
 0x240   :  { %v676_v32 = vadd.f32 %v675_v46, %v566_v45  ;;  %v697_v27 = vmax.f32 %v672_v50, 0.0  ;;  %v713_v46 = vpop.permute.xlu1 %712  ;;  %v840_v50 = vld [vmem:[%s1571_s7] sm:$0x1]  ;;  %s955_s7 = sshll.u32 %s1111_s19, 4  ;;  %s956_s7 = int_to_ptr.vmem [resolvable:$true] %s955_s7 }
 0x241   :  { %v677_v37 = vpop.f32.mrf.mxu1  ;;  %s1086_s20 = scalar_lea.vmem %s956_s7, 32  ;;  %p1091_p1 = scmp.lt.s32.totalorder %s956_s7, %s956_s7 }
 0x242   :  { %v678_v33 = vadd.f32 %v677_v37, %v566_v45  ;;  %v698_v28 = vmax.f32 %v676_v32, 0.0  ;;  %p1087_p0 = scmp.ne.s32.totalorder %s956_s7, %s1086_s20  ;;  %p1092_p2 = scmp.lt.s32.totalorder %s1086_s20, %s1086_s20 }
 0x243   :  { %v681_v36 = vpop.f32.mrf.mxu1 }
 0x244   :  { %v682_v34 = vadd.f32 %v681_v36, %v571_v44  ;;  %v699_v54 = vmax.f32 %v678_v33, 0.0  ;;  %p1093_p3 = por %p1092_p2, %p1091_p1 }
 0x245   :  { %v683_v48 = vpop.f32.mrf.mxu1 }
 0x246   :  { %v684_v49 = vadd.f32 %v683_v48, %v571_v44  ;;  %v700_v30 = vmax.f32 %v682_v34, 0.0  ;;  %p1094_p4 = pnand %p1093_p3, %p1087_p0 }
 0x248   :  { %v701_v51 = vmax.f32 %v684_v49, 0.0 }
 0x24a   :  { %759 = vmatprep.subr.mxu1 %v701_v51  ;;  %v847_v51 = vlaneseq }
 0x24b   :  { %760 = vmatpush1.msra.mxu1 %v700_v30  ;;  %v930_v30 = vunpack.c.l.s4 %v1110_v52 }
 0x24c   :  { %761 = vmatprep.subr.mxu1 %v699_v54  ;;  %v848_v31 = vshrl.u32 %v847_v51, 7  ;;  %v845_v54 = vpop.permute.xlu0 %844  ;;  %vm946_vm3 = vcmp.lt.s32.totalorder %v847_v51, 256 }
 0x24d   :  { %762 = vmatpush1.msra.mxu1 %v698_v28  ;;  %v931_v29 = vunpack.c.0.s8 %v930_v30 }
 0x24e   :  { %763 = vmatprep.subr.mxu1 %v697_v27  ;;  %v849_v53 = vsub.s32 0, %v848_v31 }
 0x24f   :  { %764 = vmatpush1.msra.mxu1 %v696_v26  ;;  %v934_v26 = vsub.s32 %v931_v29, %v848_v31 }
 0x250   :  { %765 = vmatprep.subr.mxu1 %v695_v59  ;;  %v850_v28 = vrot.slane %v845_v54, %v849_v53 }
 0x251   :  { %766 = vmatpush1.msra.mxu1 %v694_v24 }
 0x252   :  { %767 = vmatprep.subr.mxu1 %v693_v62 }
 0x253   :  { %768 = vmatpush1.msra.mxu1 %v692_v22 }
 0x254   :  { %769 = vmatprep.subr.mxu1 %v691_v21 }
 0x255   :  { %770 = vmatpush1.msra.mxu1 %v690_v20 }
 0x256   :  { %771 = vmatprep.subr.mxu1 %v689_v2 }
 0x257   :  { %772 = vmatpush1.msra.mxu1 %v688_v3 }
 0x258   :  { %773 = vmatprep.subr.mxu1 %v687_v19 }
 0x259   :  { %774 = vmatpush1.msra.mxu1 %v686_v18 }
 0x25a   :  { %1011 = vmatmul.mubr.msk.f32.vlgmr.msra.gmra.mxu1 %vm730_vm1, %v702_v16 }
 0x25b   :  { %813 = vmatprep.mubr.f32.mxu1 %v1109_v15 }
 0x25e   :  { %1012 = vmatmul.mubr.msk.f32.gmra.mxu1 %vm730_vm1, %v703_v17 }
 0x25f   :  { %819 = vmatprep.mubr.f32.mxu1 %v1109_v15 }
 0x262   :  { %1013 = vmatmul.mubr.msk.f32.gmra.mxu1 %vm730_vm1, %v704_v4 }
 0x263   :  { %825 = vmatprep.mubr.f32.mxu1 %v1109_v15 }
 0x266   :  { %1014 = vmatmul.mubr.msk.f32.gmra.mxu1 %vm730_vm1, %v705_v5 }
 0x267   :  { %919 = vmatprep.mubr.f32.mxu1 %v1109_v15 }
 0x31a   :  { %v809_v6 = vpop.f32.mrf.mxu1 }
 0x31b   :  { %v810_v35 = vadd.f32 %v809_v6, %v713_v46 }
 0x31c   :  { %v811_v7 = vpop.f32.mrf.mxu1 }
 0x31d   :  { %v812_v47 = vadd.f32 %v811_v7, %v713_v46  ;;  %v832_v32 = vmax.f32 %v810_v35, 0.0 }
 0x31e   :  { %v815_v8 = vpop.f32.mrf.mxu1 }
 0x31f   :  { %v816_v37 = vadd.f32 %v815_v8, %v718_v40  ;;  %v833_v49 = vmax.f32 %v812_v47, 0.0 }
 0x320   :  { %v817_v9 = vpop.f32.mrf.mxu1 }
 0x321   :  { %v818_v38 = vadd.f32 %v817_v9, %v718_v40  ;;  %v834_v33 = vmax.f32 %v816_v37, 0.0 }
 0x322   :  { %v821_v10 = vpop.f32.mrf.mxu1 }
 0x323   :  { %v822_v44 = vadd.f32 %v821_v10, %v723_v13  ;;  %v835_v48 = vmax.f32 %v818_v38, 0.0 }
 0x324   :  { %v823_v12 = vpop.f32.mrf.mxu1 }
 0x325   :  { %v824_v42 = vadd.f32 %v823_v12, %v723_v13  ;;  %v836_v34 = vmax.f32 %v822_v44, 0.0 }
 0x326   :  { %v827_v14 = vpop.f32.mrf.mxu1 }
 0x327   :  { %v828_v39 = vadd.f32 %v827_v14, %v728_v11  ;;  %v837_v36 = vmax.f32 %v824_v42, 0.0 }
 0x328   :  { %v829_v41 = vpop.f32.mrf.mxu1 }
 0x329   :  { %v830_v43 = vadd.f32 %v829_v41, %v728_v11  ;;  %v838_v15 = vmax.f32 %v828_v39, 0.0 }
 0x32b   :  { %v839_v45 = vmax.f32 %v830_v43, 0.0 }
 0x32d   :  { %879 = vmatprep.subr.mxu1 %v839_v45 }
 0x32e   :  { %880 = vmatpush1.msra.mxu1 %v838_v15 }
 0x32f   :  { %881 = vmatprep.subr.mxu1 %v837_v36 }
 0x330   :  { %882 = vmatpush1.msra.mxu1 %v836_v34 }
 0x331   :  { %883 = vmatprep.subr.mxu1 %v835_v48 }
 0x332   :  { %884 = vmatpush1.msra.mxu1 %v834_v33 }
 0x333   :  { %885 = vmatprep.subr.mxu1 %v833_v49 }
 0x334   :  { %886 = vmatpush1.msra.mxu1 %v832_v32 }
 0x335   :  { %1015 = vmatmul.mubr.msk.f32.vlgmr.msra.gmra.mxu1 %vm851_vm2, %v840_v50 }
 0x3f5   :  { %v921_v55 = vpop.f32.mrf.mxu1 }
 0x3f6   :  { %v922_v27 = vadd.f32 %v921_v55, %v850_v28 }
 0x3f7   :  { %v923_v56 = vpop.f32.mrf.mxu1 }
 0x3f8   :  { %v924_v57 = vadd.f32 %v923_v56, %v850_v28 }
 0x3fa   :  { %v928_v58 = vcombine.low %v922_v27, %v924_v57 }
 0x3fc   :  { %v935_v59 = vrot.slane %v928_v58, %v934_v26 }
 0x3fe   :  { %v942_v25 = vrot.slane %v935_v59, %v934_v26 }
 0x400   :  { %948 = vst.msk [vmem:[#allocation3] sm:$0x3] %vm946_vm3, %v942_v25 }
 0x401   :  { %1097 = shalt.err (!%p1094_p4)
}
 0x402   :  { %958 = dma.vmem_to_hbm [thread:$0]  %s956_s7, 32, %s1573_s9, [#allocation4]  }
 0x403   :  { %1106 = dma.done.wait [#allocation4], 32  }
 0x404   :  { %1107 = vsyncadd [#allocation4], 4294967264 }
 0x405   :  { %962 = vsyncpa [#allocation4], 1 }

</bundles_post_ra>
